<compile_context>
chip_gen: v6e
topology: v6e:2x2x1
jax: 0.10.0
libtpu: 0.0.40
codegen_flags: <defaults>
</compile_context>

<pallas_src>
import math

import jax
import jax.numpy as jnp
from jax.experimental import pallas as pl
from jax.experimental.pallas import tpu as pltpu


_NC_PAD = 128     # pad num_classes to one full lane tile (dense vst, one pass)
_BT_MAX = 32      # max batch tile (multiple of 8; v7x-safe VMEM footprint)


def _round_up(x, m):
    return ((x + m - 1) // m) * m


def _mvsa_head_kernel(pool_ref, img_ref, txt_ref, wp_ref, bp_ref,
                      wi_ref, wt_ref, bfc_ref, out_ref):
    """One batch tile of the fused MVSA head.

    pool_ref : (BT, BT*HW)      bf16  block-diag pooling matrix, 1/HW folded in
    img_ref  : (BT*HW, C_img)   bf16  channel-last conv features (rows=(b,hw))
    txt_ref  : (BT, H_txt)      bf16  BERT [CLS] hidden state
    wp_ref   : (H_txt, H_txt)   bf16  BERT pooler weight
    bp_ref   : (1, H_txt)       f32   BERT pooler bias
    wi_ref   : (C_img, 128)     bf16  classifier weight, image half (padded)
    wt_ref   : (H_txt, 128)     bf16  classifier weight, text half  (padded)
    bfc_ref  : (1, 128)         f32   classifier bias (padded)
    out_ref  : (BT, 128)        f32   padded logits
    """
    # --- ResNet tail: global average pool as a single MXU contraction --------
    img_feat = jnp.dot(pool_ref[...], img_ref[...],
                       preferred_element_type=jnp.float32)            # (BT, C)

    # --- BERT pooler: dense + tanh on the [CLS] hidden state -----------------
    pooled = jnp.tanh(
        jnp.dot(txt_ref[...], wp_ref[...], preferred_element_type=jnp.float32)
        + bp_ref[...])                                                 # (BT, H_txt)

    # --- Fusion classifier: two partial matmuls accumulated in f32 -----------
    # (equivalent to cat([img_feat, pooled], 1) @ Wfc + b, without the concat
    #  copy; K is just split 2048 + 768)
    logits = (jnp.dot(img_feat.astype(jnp.bfloat16), wi_ref[...],
                      preferred_element_type=jnp.float32)
              + jnp.dot(pooled.astype(jnp.bfloat16), wt_ref[...],
                        preferred_element_type=jnp.float32)
              + bfc_ref[...])                                          # (BT, 128)
    out_ref[...] = logits.astype(out_ref.dtype)


def mvsa_forward(img_fm_nhwc, txt_cls, wp, bp, wfc_img, wfc_txt, bfc):
    """MVSA head.

    img_fm_nhwc : (B, H, W, C_img) last conv feature map, NHWC (native TPU conv
                  layout -> no transpose pass over the dominant tensor).
    txt_cls     : (B, H_txt) BERT [CLS] hidden state (pooler input).
    wp, bp      : BERT pooler dense weight / bias.
    wfc_img     : (C_img, num_classes) image half of the fc weight.
    wfc_txt     : (H_txt, num_classes) text half of the fc weight.
    bfc         : (1, num_classes) fc bias.
    Returns (B, num_classes) logits in f32.
    """
    B, H, W, C = img_fm_nhwc.shape
    HW = H * W
    H_txt = txt_cls.shape[-1]
    num_classes = wfc_img.shape[1]

    # Batch tile: multiple of 8 (keeps (BT*HW, C) sublane-divisible even for
    # odd HW), capped so the double-buffered img stream fits v7x VMEM.
    bt = min(_BT_MAX, _round_up(max(B, 1), 8))

    # ---- layout plumbing: bf16 activations, padded batch, padded classes ----
    img = img_fm_nhwc.astype(jnp.bfloat16)       # no-op if backbone emits bf16
    txt = txt_cls.astype(jnp.bfloat16)
    wp_b = wp.astype(jnp.bfloat16)
    bp_f = bp.astype(jnp.float32).reshape(1, H_txt)

    wi_p = jnp.pad(wfc_img.astype(jnp.bfloat16),
                   ((0, 0), (0, _NC_PAD - num_classes)))
    wt_p = jnp.pad(wfc_txt.astype(jnp.bfloat16),
                   ((0, 0), (0, _NC_PAD - num_classes)))
    bfc_p = jnp.pad(bfc.astype(jnp.float32).reshape(1, num_classes),
                    ((0, 0), (0, _NC_PAD - num_classes)))

    pad_b = (-B) % bt
    if pad_b:
        img = jnp.pad(img, ((0, pad_b), (0, 0), (0, 0), (0, 0)))
        txt = jnp.pad(txt, ((0, pad_b), (0, 0)))
    B_pad = B + pad_b
    img2d = img.reshape(B_pad * HW, C)           # free view; rows grouped per example

    # Grid-invariant block-diagonal pooling matrix with the 1/HW scale folded
    # in: pool[b, b*HW + h] = 1/HW.  Built once, ~bt*bt*HW*2 bytes.
    row = jnp.arange(bt, dtype=jnp.int32)[:, None]
    col = jnp.arange(bt * HW, dtype=jnp.int32)[None, :]
    pool = jnp.where(col // HW == row, 1.0 / HW, 0.0).astype(jnp.bfloat16)

    grid = (B_pad // bt,)

    # Streamed operands: default double-buffering.
    img_spec = pl.BlockSpec((bt * HW, C), lambda i: (i, 0))
    txt_spec = pl.BlockSpec((bt, H_txt), lambda i: (i, 0))
    out_spec = pl.BlockSpec((bt, _NC_PAD), lambda i: (i, 0))
    # Grid-invariant operands: single-buffered (no point double-buffering
    # tensors whose block never changes across the grid).
    inv = pl.Buffered(1)
    pool_spec = pl.BlockSpec(pool.shape, lambda i: (0, 0), pipeline_mode=inv)
    wp_spec = pl.BlockSpec(wp_b.shape, lambda i: (0, 0), pipeline_mode=inv)
    bp_spec = pl.BlockSpec(bp_f.shape, lambda i: (0, 0), pipeline_mode=inv)
    wi_spec = pl.BlockSpec(wi_p.shape, lambda i: (0, 0), pipeline_mode=inv)
    wt_spec = pl.BlockSpec(wt_p.shape, lambda i: (0, 0), pipeline_mode=inv)
    bfc_spec = pl.BlockSpec(bfc_p.shape, lambda i: (0, 0), pipeline_mode=inv)

    # VMEM budget from the actual block footprint (+ intermediates + headroom),
    # clamped to 96 MiB so v5e/v6e can take bigger tiles; BT=32 keeps the
    # request far below v7x's 64 MiB per-TensorCore physical VMEM.
    def nbytes(shape, dtype):
        return math.prod(shape) * jnp.dtype(dtype).itemsize

    footprint = (
        2 * nbytes((bt * HW, C), jnp.bfloat16)       # img double-buffer
        + 2 * nbytes((bt, H_txt), jnp.bfloat16)      # txt double-buffer
        + 2 * nbytes((bt, _NC_PAD), jnp.float32)     # out double-buffer
        + nbytes(pool.shape, jnp.bfloat16)           # invariant operands (x1)
        + nbytes(wp_b.shape, jnp.bfloat16)
        + nbytes(bp_f.shape, jnp.float32)
        + nbytes(wi_p.shape, jnp.bfloat16)
        + nbytes(wt_p.shape, jnp.bfloat16)
        + nbytes(bfc_p.shape, jnp.float32)
        + nbytes((bt, C), jnp.float32)               # img_feat intermediate
        + nbytes((bt, H_txt), jnp.float32)           # pooled intermediate
        + nbytes((bt, _NC_PAD), jnp.float32))        # logits intermediate
    vmem_limit = int(min(max(footprint + (8 << 20), 16 << 20), 96 << 20))

    out_padded = pl.pallas_call(
        _mvsa_head_kernel,
        out_shape=jax.ShapeDtypeStruct((B_pad, _NC_PAD), jnp.float32),
        grid=grid,
        in_specs=[pool_spec, img_spec, txt_spec, wp_spec, bp_spec,
                  wi_spec, wt_spec, bfc_spec],
        out_specs=out_spec,
        compiler_params=pltpu.CompilerParams(
            dimension_semantics=("parallel",),
            vmem_limit_bytes=vmem_limit),
    )(pool, img2d, txt, wp_b, bp_f, wi_p, wt_p, bfc_p)

    return out_padded[:B, :num_classes]


def mvsa_reference(img_fm_nhwc, txt_cls, wp, bp, wfc_img, wfc_txt, bfc):
    """Module-faithful f32 reference (GAP -> pooler -> concat -> fc)."""
    img_feat = jnp.mean(img_fm_nhwc.astype(jnp.float32), axis=(1, 2))   # (B, C)
    pooled = jnp.tanh(txt_cls @ wp + bp)
    feature = jnp.concatenate([img_feat, pooled], axis=1)
    wfc = jnp.concatenate([wfc_img, wfc_txt], axis=0)
    return feature @ wfc + bfc


if __name__ == "__main__":
    # Small shapes consistent with the module's structure:
    #   B=2, C_img=256 (stand-in for 2048), H=W=8 (stand-in for 7x7),
    #   H_txt=128 (stand-in for 768), num_classes=3.
    B, C_IMG, H, W = 2, 256, 8, 8
    H_TXT, NUM_CLASSES = 128, 3

    key = jax.random.PRNGKey(0)
    k_img, k_txt, k_wp, k_bp, k_wi, k_wt, k_bfc = jax.random.split(key, 7)

    # Synthetic backbone activations.  Image features come in NHWC, the native
    # TPU conv layout, so the wrapper never transposes the dominant tensor.
    img_fm = jax.random.normal(k_img, (B, H, W, C_IMG), dtype=jnp.float32)
    txt_cls = jax.random.normal(k_txt, (B, H_TXT), dtype=jnp.float32)

    # Deterministic parameter init (shapes implied by the module's __init__).
    wp = jax.random.normal(k_wp, (H_TXT, H_TXT), dtype=jnp.float32) * 0.02
    bp = jax.random.normal(k_bp, (1, H_TXT), dtype=jnp.float32) * 0.02
    wfc_img = jax.random.normal(k_wi, (C_IMG, NUM_CLASSES), dtype=jnp.float32) * 0.02
    wfc_txt = jax.random.normal(k_wt, (H_TXT, NUM_CLASSES), dtype=jnp.float32) * 0.02
    bfc = jax.random.normal(k_bfc, (1, NUM_CLASSES), dtype=jnp.float32) * 0.02

    out = jax.block_until_ready(
        mvsa_forward(img_fm, txt_cls, wp, bp, wfc_img, wfc_txt, bfc))

    # Reference on the same bf16-rounded operands the kernel consumes, so only
    # accumulation-order / intermediate-rounding noise remains.
    img_r = img_fm.astype(jnp.bfloat16).astype(jnp.float32)
    txt_r = txt_cls.astype(jnp.bfloat16).astype(jnp.float32)
    wp_r = wp.astype(jnp.bfloat16).astype(jnp.float32)
    wi_r = wfc_img.astype(jnp.bfloat16).astype(jnp.float32)
    wt_r = wfc_txt.astype(jnp.bfloat16).astype(jnp.float32)
    ref = mvsa_reference(img_r, txt_r, wp_r, bp, wi_r, wt_r, bfc)

    assert out.shape == (B, NUM_CLASSES)
    assert jnp.allclose(out, ref, atol=2e-2, rtol=2e-2), (out, ref)

    print("KERNEL_OK")
</pallas_src>

<mosaic_0001>
module attributes {stable_mosaic.version = 11 : i64} {
  func.func @_mvsa_head_kernel(%arg0: i32, %arg1: memref<8x512xbf16, #tpu.memory_space<vmem>>, %arg2: memref<512x256xbf16, #tpu.memory_space<vmem>>, %arg3: memref<8x128xbf16, #tpu.memory_space<vmem>>, %arg4: memref<128x128xbf16, #tpu.memory_space<vmem>>, %arg5: memref<1x128xf32, #tpu.memory_space<vmem>>, %arg6: memref<256x128xbf16, #tpu.memory_space<vmem>>, %arg7: memref<128x128xbf16, #tpu.memory_space<vmem>>, %arg8: memref<1x128xf32, #tpu.memory_space<vmem>>, %arg9: memref<8x128xf32, #tpu.memory_space<vmem>>) attributes {dimension_semantics = [#tpu.dimension_semantics<parallel>], iteration_bounds = array<i64: 1>, scalar_prefetch = 0 : i64, scratch_operands = 0 : i64, tpu.core_type = #tpu.core_type<tc>, window_params = [{pipeline_mode = #tpu.pipeline_mode<synchronous>, transform_indices = @transform_0, window_bounds = array<i64: 8, 512>}, {transform_indices = @transform_1, window_bounds = array<i64: 512, 256>}, {transform_indices = @transform_2, window_bounds = array<i64: 8, 128>}, {pipeline_mode = #tpu.pipeline_mode<synchronous>, transform_indices = @transform_3, window_bounds = array<i64: 128, 128>}, {pipeline_mode = #tpu.pipeline_mode<synchronous>, transform_indices = @transform_4, window_bounds = array<i64: 1, 128>}, {pipeline_mode = #tpu.pipeline_mode<synchronous>, transform_indices = @transform_5, window_bounds = array<i64: 256, 128>}, {pipeline_mode = #tpu.pipeline_mode<synchronous>, transform_indices = @transform_6, window_bounds = array<i64: 128, 128>}, {pipeline_mode = #tpu.pipeline_mode<synchronous>, transform_indices = @transform_7, window_bounds = array<i64: 1, 128>}, {transform_indices = @transform_8, window_bounds = array<i64: 8, 128>}]} {
    %c0 = arith.constant 0 : index
    %c0_0 = arith.constant 0 : index
    %0 = vector.load %arg1[%c0, %c0_0] : memref<8x512xbf16, #tpu.memory_space<vmem>>, vector<8x512xbf16>
    %c0_1 = arith.constant 0 : index
    %c0_2 = arith.constant 0 : index
    %1 = vector.load %arg2[%c0_1, %c0_2] : memref<512x256xbf16, #tpu.memory_space<vmem>>, vector<512x256xbf16>
    %cst = arith.constant dense<0.000000e+00> : vector<8x256xf32>
    %2 = tpu.matmul %0, %1, %cst {dimension_numbers = #tpu.dot_dimension_numbers<[1], [0], [0], [1], [0, 0, 1, 1], [], []>} : vector<8x512xbf16>, vector<512x256xbf16>, vector<8x256xf32> -> vector<8x256xf32>
    %c0_3 = arith.constant 0 : index
    %c0_4 = arith.constant 0 : index
    %3 = vector.load %arg3[%c0_3, %c0_4] : memref<8x128xbf16, #tpu.memory_space<vmem>>, vector<8x128xbf16>
    %c0_5 = arith.constant 0 : index
    %c0_6 = arith.constant 0 : index
    %4 = vector.load %arg4[%c0_5, %c0_6] : memref<128x128xbf16, #tpu.memory_space<vmem>>, vector<128x128xbf16>
    %cst_7 = arith.constant dense<0.000000e+00> : vector<8x128xf32>
    %5 = tpu.matmul %3, %4, %cst_7 {dimension_numbers = #tpu.dot_dimension_numbers<[1], [0], [0], [1], [0, 0, 1, 1], [], []>} : vector<8x128xbf16>, vector<128x128xbf16>, vector<8x128xf32> -> vector<8x128xf32>
    %c0_8 = arith.constant 0 : index
    %c0_9 = arith.constant 0 : index
    %6 = vector.load %arg5[%c0_8, %c0_9] : memref<1x128xf32, #tpu.memory_space<vmem>>, vector<1x128xf32>
    %7 = vector.broadcast %6 : vector<1x128xf32> to vector<8x128xf32>
    %8 = arith.addf %5, %7 : vector<8x128xf32>
    %9 = math.tanh %8 : vector<8x128xf32>
    %10 = arith.truncf %2 : vector<8x256xf32> to vector<8x256xbf16>
    %c0_10 = arith.constant 0 : index
    %c0_11 = arith.constant 0 : index
    %11 = vector.load %arg6[%c0_10, %c0_11] : memref<256x128xbf16, #tpu.memory_space<vmem>>, vector<256x128xbf16>
    %cst_12 = arith.constant dense<0.000000e+00> : vector<8x128xf32>
    %12 = tpu.matmul %10, %11, %cst_12 {dimension_numbers = #tpu.dot_dimension_numbers<[1], [0], [0], [1], [0, 0, 1, 1], [], []>} : vector<8x256xbf16>, vector<256x128xbf16>, vector<8x128xf32> -> vector<8x128xf32>
    %13 = arith.truncf %9 : vector<8x128xf32> to vector<8x128xbf16>
    %c0_13 = arith.constant 0 : index
    %c0_14 = arith.constant 0 : index
    %14 = vector.load %arg7[%c0_13, %c0_14] : memref<128x128xbf16, #tpu.memory_space<vmem>>, vector<128x128xbf16>
    %cst_15 = arith.constant dense<0.000000e+00> : vector<8x128xf32>
    %15 = tpu.matmul %13, %14, %cst_15 {dimension_numbers = #tpu.dot_dimension_numbers<[1], [0], [0], [1], [0, 0, 1, 1], [], []>} : vector<8x128xbf16>, vector<128x128xbf16>, vector<8x128xf32> -> vector<8x128xf32>
    %16 = arith.addf %12, %15 : vector<8x128xf32>
    %c0_16 = arith.constant 0 : index
    %c0_17 = arith.constant 0 : index
    %17 = vector.load %arg8[%c0_16, %c0_17] : memref<1x128xf32, #tpu.memory_space<vmem>>, vector<1x128xf32>
    %18 = vector.broadcast %17 : vector<1x128xf32> to vector<8x128xf32>
    %19 = arith.addf %16, %18 : vector<8x128xf32>
    %c0_18 = arith.constant 0 : index
    %c0_19 = arith.constant 0 : index
    %20 = vector.load %arg9[%c0_18, %c0_19] : memref<8x128xf32, #tpu.memory_space<vmem>>, vector<8x128xf32>
    tpu.vector_store %arg9[%c0_18, %c0_19], %19 {strides = array<i32>} : memref<8x128xf32, #tpu.memory_space<vmem>>, vector<8x128xf32>,
    return
  }
  func.func @transform_0(%arg0: i32) -> (i32, i32) {
    %c0_i32 = arith.constant 0 : i32
    %c0_i32_0 = arith.constant 0 : i32
    %c0_i32_1 = arith.constant 0 : i32
    return %c0_i32, %c0_i32_0 : i32, i32
  }
  func.func @transform_1(%arg0: i32) -> (i32, i32) {
    %c0_i32 = arith.constant 0 : i32
    %c0_i32_0 = arith.constant 0 : i32
    return %arg0, %c0_i32 : i32, i32
  }
  func.func @transform_2(%arg0: i32) -> (i32, i32) {
    %c0_i32 = arith.constant 0 : i32
    %c0_i32_0 = arith.constant 0 : i32
    return %arg0, %c0_i32 : i32, i32
  }
  func.func @transform_3(%arg0: i32) -> (i32, i32) {
    %c0_i32 = arith.constant 0 : i32
    %c0_i32_0 = arith.constant 0 : i32
    %c0_i32_1 = arith.constant 0 : i32
    return %c0_i32, %c0_i32_0 : i32, i32
  }
  func.func @transform_4(%arg0: i32) -> (i32, i32) {
    %c0_i32 = arith.constant 0 : i32
    %c0_i32_0 = arith.constant 0 : i32
    %c0_i32_1 = arith.constant 0 : i32
    return %c0_i32, %c0_i32_0 : i32, i32
  }
  func.func @transform_5(%arg0: i32) -> (i32, i32) {
    %c0_i32 = arith.constant 0 : i32
    %c0_i32_0 = arith.constant 0 : i32
    %c0_i32_1 = arith.constant 0 : i32
    return %c0_i32, %c0_i32_0 : i32, i32
  }
  func.func @transform_6(%arg0: i32) -> (i32, i32) {
    %c0_i32 = arith.constant 0 : i32
    %c0_i32_0 = arith.constant 0 : i32
    %c0_i32_1 = arith.constant 0 : i32
    return %c0_i32, %c0_i32_0 : i32, i32
  }
  func.func @transform_7(%arg0: i32) -> (i32, i32) {
    %c0_i32 = arith.constant 0 : i32
    %c0_i32_0 = arith.constant 0 : i32
    %c0_i32_1 = arith.constant 0 : i32
    return %c0_i32, %c0_i32_0 : i32, i32
  }
  func.func @transform_8(%arg0: i32) -> (i32, i32) {
    %c0_i32 = arith.constant 0 : i32
    %c0_i32_0 = arith.constant 0 : i32
    return %arg0, %c0_i32 : i32, i32
  }
}

</mosaic_0001>

<bundles_post_ra>
// kernel: tpu_custom_call.1
= control target key start
LH: loop header
LB: loop body
LE: loop exit
PB: predicated region body
PF: predicated region fallthrough
CT: control target
= control target key end

     0   :  { %13 = vsyncpa [#allocation3], 0  ;;  %s1597_s0 = inlined_call_operand.hbm [shape: bf16[8,512], index: 0, kind: input, shape index: {}]   ;;  %s1598_s1 = inlined_call_operand.hbm [shape: bf16[512,256], index: 1, kind: input, shape index: {}]   ;;  %s1599_s2 = inlined_call_operand.hbm [shape: bf16[8,128], index: 2, kind: input, shape index: {}]   ;;  %s1600_s3 = inlined_call_operand.hbm [shape: bf16[128,128], index: 3, kind: input, shape index: {}]   ;;  %s1601_s4 = inlined_call_operand.vmem [shape: f32[1,128], index: 4, kind: input, shape index: {}]   ;;  %s1602_s5 = inlined_call_operand.hbm [shape: bf16[256,128], index: 5, kind: input, shape index: {}]   ;;  %s1603_s6 = inlined_call_operand.hbm [shape: bf16[128,128], index: 6, kind: input, shape index: {}]   ;;  %s1604_s7 = inlined_call_operand.vmem [shape: f32[1,128], index: 7, kind: input, shape index: {}]   ;;  %s1605_s8 = inlined_call_operand.hbm [shape: f32[8,128], index: 8, kind: output, shape index: {}]  }
   0x1   :  { %14 = vsyncpa [#allocation6], 0 }
   0x2   :  { %15 = vsyncpa [#allocation9], 0 }
   0x3   :  { %16 = vsyncpa [#allocation12], 0 }
   0x4   :  { %17 = vsyncpa [#allocation4], 0  ;;  %s1485_s27 = smov [#allocation5]  }
   0x5   :  { %s33_s28 = sshll.u32 %s1485_s27, 4  ;;  %s34_s28 = int_to_ptr.vmem [resolvable:$true] %s33_s28 }
   0x6   :  { %s1343_s29 = scalar_lea.vmem %s34_s28, 8192  ;;  %p1348_p1 = scmp.lt.s32.totalorder %s34_s28, %s34_s28 }
   0x7   :  { %p1344_p0 = scmp.ne.s32.totalorder %s34_s28, %s1343_s29  ;;  %p1349_p2 = scmp.lt.s32.totalorder %s1343_s29, %s1343_s29 }
   0x9   :  { %p1350_p3 = por %p1349_p2, %p1348_p1 }
   0xb   :  { %p1351_p4 = pnand %p1350_p3, %p1344_p0 }
   0xd   :  { %1354 = shalt.err (!%p1351_p4)
}
   0xe   :  { %s1486_s30 = smov 128   ;;  %s1487_s9 = smov 8  }
   0xf   :  { %39 = dma.hbm_to_vmem [thread:$0]  %s1598_s1, 8192, %s34_s28, [#allocation6], %s1486_s30, %s1486_s30, %s1487_s9  }
  0x10   :  { %s1488_s12 = smov [#allocation8]  }
  0x11   :  { %s55_s13 = sshll.u32 %s1488_s12, 4  ;;  %s56_s13 = int_to_ptr.vmem [resolvable:$true] %s55_s13 }
  0x12   :  { %s1363_s14 = scalar_lea.vmem %s56_s13, 1024  ;;  %p1368_p6 = scmp.lt.s32.totalorder %s56_s13, %s56_s13 }
  0x13   :  { %p1364_p5 = scmp.ne.s32.totalorder %s56_s13, %s1363_s14  ;;  %p1369_p7 = scmp.lt.s32.totalorder %s1363_s14, %s1363_s14 }
  0x15   :  { %p1370_p8 = por %p1369_p7, %p1368_p6 }
  0x17   :  { %p1371_p9 = pnand %p1370_p8, %p1364_p5 }
  0x19   :  { %1374 = shalt.err (!%p1371_p9)
}
  0x1a   :  { %s1489_s15 = smov 64   ;;  %s1490_s16 = smov 4  }
  0x1b   :  { %61 = dma.hbm_to_vmem [thread:$0]  %s1600_s3, 1024, %s56_s13, [#allocation9], %s1489_s15, %s1489_s15, %s1490_s16  }
  0x1c   :  { %s1491_s1 = smov [#allocation2]   ;;  %s1492_s20 = smov [#allocation7]  }
  0x1d   :  { %s24_s19 = sshll.u32 %s1491_s1, 4  ;;  %s46_s21 = sshll.u32 %s1492_s20, 4  ;;  %s25_s19 = int_to_ptr.vmem [resolvable:$true] %s24_s19  ;;  %s47_s21 = int_to_ptr.vmem [resolvable:$true] %s46_s21 }
  0x1e   :  { %s1383_s22 = scalar_lea.vmem %s25_s19, 256  ;;  %p1388_p11 = scmp.lt.s32.totalorder %s25_s19, %s25_s19 }
  0x1f   :  { %p1384_p10 = scmp.ne.s32.totalorder %s25_s19, %s1383_s22  ;;  %p1389_p12 = scmp.lt.s32.totalorder %s1383_s22, %s1383_s22 }
  0x21   :  { %p1390_p13 = por %p1389_p12, %p1388_p11 }
  0x23   :  { %p1391_p0 = pnand %p1390_p13, %p1384_p10 }
  0x25   :  { %1394 = shalt.err (!%p1391_p0)
}
  0x26   :  { %27 = dma.hbm_to_vmem [thread:$0]  %s1597_s0, 256, %s25_s19, [#allocation3]  }
  0x27   :  { %s1403_s25 = scalar_lea.vmem %s47_s21, 64  ;;  %p1408_p2 = scmp.lt.s32.totalorder %s47_s21, %s47_s21 }
  0x28   :  { %p1404_p1 = scmp.ne.s32.totalorder %s47_s21, %s1403_s25  ;;  %p1409_p3 = scmp.lt.s32.totalorder %s1403_s25, %s1403_s25 }
  0x2a   :  { %p1410_p4 = por %p1409_p3, %p1408_p2 }
  0x2c   :  { %p1411_p5 = pnand %p1410_p4, %p1404_p1 }
  0x2e   :  { %1414 = shalt.err (!%p1411_p5)
}
  0x2f   :  { %49 = dma.hbm_to_vmem [thread:$0]  %s1599_s2, 64, %s47_s21, [#allocation6]  }
  0x30   :  { %s1493_s27 = smov [#allocation10]   ;;  %s1494_s29 = smov [#allocation11]  }
  0x31   :  { %s69_s28 = sshll.u32 %s1493_s27, 4  ;;  %s81_s30 = sshll.u32 %s1494_s29, 4  ;;  %s70_s28 = int_to_ptr.vmem [resolvable:$true] %s69_s28  ;;  %s82_s30 = int_to_ptr.vmem [resolvable:$true] %s81_s30 }
  0x32   :  { %s1423_s9 = scalar_lea.vmem %s70_s28, 2048  ;;  %p1428_p7 = scmp.lt.s32.totalorder %s70_s28, %s70_s28 }
  0x33   :  { %p1424_p6 = scmp.ne.s32.totalorder %s70_s28, %s1423_s9  ;;  %p1429_p8 = scmp.lt.s32.totalorder %s1423_s9, %s1423_s9 }
  0x35   :  { %p1430_p9 = por %p1429_p8, %p1428_p7 }
  0x37   :  { %p1431_p10 = pnand %p1430_p9, %p1424_p6 }
  0x39   :  { %1434 = shalt.err (!%p1431_p10)
}
  0x3a   :  { %75 = dma.hbm_to_vmem [thread:$0]  %s1602_s5, 2048, %s70_s28, [#allocation9], %s1489_s15, %s1489_s15, %s1490_s16  }
  0x3b   :  { %s1443_s2 = scalar_lea.vmem %s82_s30, 1024  ;;  %p1448_p12 = scmp.lt.s32.totalorder %s82_s30, %s82_s30 }
  0x3c   :  { %p1444_p11 = scmp.ne.s32.totalorder %s82_s30, %s1443_s2  ;;  %p1449_p13 = scmp.lt.s32.totalorder %s1443_s2, %s1443_s2 }
  0x3e   :  { %p1450_p0 = por %p1449_p13, %p1448_p12 }
  0x40   :  { %p1451_p1 = pnand %p1450_p0, %p1444_p11 }
  0x42   :  { %1454 = shalt.err (!%p1451_p1)
}
  0x43   :  { %87 = dma.hbm_to_vmem [thread:$0]  %s1603_s6, 1024, %s82_s30, [#allocation12], %s1489_s15, %s1489_s15, %s1490_s16  }
  0x44   :  { %1475 = dma.done.wait [#allocation3], 256  }
  0x45   :  { %1476 = vsyncadd [#allocation3], 4294967040 }
  0x46   :  { %1477 = dma.done.wait [#allocation6], 8256  }
  0x47   :  { %1478 = vsyncadd [#allocation6], 4294959040 }
  0x48   :  { %1479 = dma.done.wait [#allocation9], 3072  }
  0x49   :  { %1480 = vsyncadd [#allocation9], 4294964224 }
  0x4a   :  { %1481 = dma.done.wait [#allocation12], 1024  }
  0x4b   :  { %1482 = vsyncadd [#allocation12], 4294966272  ;;  %v1201_v0 = vld [vmem:[#allocation5 + $0x74] ss:$8 sps:$4 sm:$0xff]   ;;  %v1205_v2 = vld [vmem:[#allocation5 + $0x70] ss:$8 sps:$4 sm:$0xff]  }
  0x4c   :  { %v1203_v1 = vld [vmem:[#allocation5 + $0x174] ss:$8 sps:$4 sm:$0xff]   ;;  %509 = vmatprep.subr.bf16.mxu0 %v1201_v0  ;;  %v1206_v3 = vld [vmem:[#allocation5 + $0x170] ss:$8 sps:$4 sm:$0xff]   ;;  %v1207_v4 = vld [vmem:[#allocation5 + $0x64] ss:$8 sps:$4 sm:$0xff]  }
  0x4d   :  { %550 = vmatprep.subr.bf16.mxu1 %v1203_v1  ;;  %510 = vmatpush1.bf16.msra.mxu0 %v1205_v2  ;;  %v1209_v5 = vld [vmem:[#allocation5 + $0x164] ss:$8 sps:$4 sm:$0xff]   ;;  %v1211_v6 = vld [vmem:[#allocation5 + $0x60] ss:$8 sps:$4 sm:$0xff]   ;;  %v1213_v8 = vld [vmem:[#allocation5 + $0x54] ss:$8 sps:$4 sm:$0xff]  }
  0x4e   :  { %551 = vmatpush1.bf16.msra.mxu1 %v1206_v3  ;;  %511 = vmatprep.subr.bf16.mxu0 %v1207_v4  ;;  %v1212_v7 = vld [vmem:[#allocation5 + $0x160] ss:$8 sps:$4 sm:$0xff]   ;;  %v1215_v9 = vld [vmem:[#allocation5 + $0x154] ss:$8 sps:$4 sm:$0xff]   ;;  %v1217_v10 = vld [vmem:[#allocation5 + $0x50] ss:$8 sps:$4 sm:$0xff]  }
  0x4f   :  { %552 = vmatprep.subr.bf16.mxu1 %v1209_v5  ;;  %v1218_v11 = vld [vmem:[#allocation5 + $0x150] ss:$8 sps:$4 sm:$0xff]   ;;  %v1219_v12 = vld [vmem:[#allocation5 + $0x44] ss:$8 sps:$4 sm:$0xff]   ;;  %v1223_v14 = vld [vmem:[#allocation5 + $0x40] ss:$8 sps:$4 sm:$0xff]  }
  0x50   :  { %v1221_v13 = vld [vmem:[#allocation5 + $0x144] ss:$8 sps:$4 sm:$0xff]   ;;  %v1224_v15 = vld [vmem:[#allocation5 + $0x140] ss:$8 sps:$4 sm:$0xff]   ;;  %v1225_v16 = vld [vmem:[#allocation5 + $0x34] ss:$8 sps:$4 sm:$0xff]  }
  0x51   :  { %512 = vmatpush1.bf16.msra.mxu0 %v1211_v6  ;;  %v1227_v17 = vld [vmem:[#allocation5 + $0x134] ss:$8 sps:$4 sm:$0xff]   ;;  %v1229_v18 = vld [vmem:[#allocation5 + $0x30] ss:$8 sps:$4 sm:$0xff]   ;;  %v1231_v20 = vld [vmem:[#allocation5 + $0x24] ss:$8 sps:$4 sm:$0xff]  }
  0x52   :  { %553 = vmatpush1.bf16.msra.mxu1 %v1212_v7  ;;  %513 = vmatprep.subr.bf16.mxu0 %v1213_v8  ;;  %v1230_v19 = vld [vmem:[#allocation5 + $0x130] ss:$8 sps:$4 sm:$0xff]   ;;  %v1233_v21 = vld [vmem:[#allocation5 + $0x124] ss:$8 sps:$4 sm:$0xff]   ;;  %v1235_v22 = vld [vmem:[#allocation5 + $0x20] ss:$8 sps:$4 sm:$0xff]  }
  0x53   :  { %554 = vmatprep.subr.bf16.mxu1 %v1215_v9  ;;  %v1236_v23 = vld [vmem:[#allocation5 + $0x120] ss:$8 sps:$4 sm:$0xff]   ;;  %v1237_v24 = vld [vmem:[#allocation5 + $0x14] ss:$8 sps:$4 sm:$0xff]   ;;  %v1241_v26 = vld [vmem:[#allocation5 + $0x10] ss:$8 sps:$4 sm:$0xff]  }
  0x54   :  { %v1239_v25 = vld [vmem:[#allocation5 + $0x114] ss:$8 sps:$4 sm:$0xff]   ;;  %v1242_v27 = vld [vmem:[#allocation5 + $0x110] ss:$8 sps:$4 sm:$0xff]   ;;  %v1243_v28 = vld [vmem:[#allocation5 + $0x4] ss:$8 sps:$4 sm:$0xff]  }
  0x55   :  { %514 = vmatpush1.bf16.msra.mxu0 %v1217_v10  ;;  %v1245_v29 = vld [vmem:[#allocation5 + $0x104] ss:$8 sps:$4 sm:$0xff]   ;;  %v1247_v30 = vld [vmem:[#allocation5] ss:$8 sps:$4 sm:$0xff]   ;;  %v1249_v32 = vld [vmem:[#allocation5 + $0xf4] ss:$8 sps:$4 sm:$0xff]  }
  0x56   :  { %555 = vmatpush1.bf16.msra.mxu1 %v1218_v11  ;;  %515 = vmatprep.subr.bf16.mxu0 %v1219_v12  ;;  %v1248_v31 = vld [vmem:[#allocation5 + $0x100] ss:$8 sps:$4 sm:$0xff]   ;;  %v1251_v33 = vld [vmem:[#allocation5 + $0x1f4] ss:$8 sps:$4 sm:$0xff]   ;;  %v1253_v34 = vld [vmem:[#allocation5 + $0xf0] ss:$8 sps:$4 sm:$0xff]  }
  0x57   :  { %556 = vmatprep.subr.bf16.mxu1 %v1221_v13  ;;  %v1254_v35 = vld [vmem:[#allocation5 + $0x1f0] ss:$8 sps:$4 sm:$0xff]   ;;  %v1255_v36 = vld [vmem:[#allocation5 + $0xe4] ss:$8 sps:$4 sm:$0xff]   ;;  %v1259_v38 = vld [vmem:[#allocation5 + $0xe0] ss:$8 sps:$4 sm:$0xff]  }
  0x58   :  { %v1257_v37 = vld [vmem:[#allocation5 + $0x1e4] ss:$8 sps:$4 sm:$0xff]   ;;  %v1260_v39 = vld [vmem:[#allocation5 + $0x1e0] ss:$8 sps:$4 sm:$0xff]   ;;  %v1261_v40 = vld [vmem:[#allocation5 + $0xd4] ss:$8 sps:$4 sm:$0xff]  }
  0x59   :  { %516 = vmatpush1.bf16.msra.mxu0 %v1223_v14  ;;  %v1263_v41 = vld [vmem:[#allocation5 + $0x1d4] ss:$8 sps:$4 sm:$0xff]   ;;  %v1265_v42 = vld [vmem:[#allocation5 + $0xd0] ss:$8 sps:$4 sm:$0xff]   ;;  %v1267_v44 = vld [vmem:[#allocation5 + $0xc4] ss:$8 sps:$4 sm:$0xff]  }
  0x5a   :  { %557 = vmatpush1.bf16.msra.mxu1 %v1224_v15  ;;  %517 = vmatprep.subr.bf16.mxu0 %v1225_v16  ;;  %v1266_v43 = vld [vmem:[#allocation5 + $0x1d0] ss:$8 sps:$4 sm:$0xff]   ;;  %v1269_v45 = vld [vmem:[#allocation5 + $0x1c4] ss:$8 sps:$4 sm:$0xff]   ;;  %v1271_v46 = vld [vmem:[#allocation5 + $0xc0] ss:$8 sps:$4 sm:$0xff]  }
  0x5b   :  { %558 = vmatprep.subr.bf16.mxu1 %v1227_v17  ;;  %v1272_v47 = vld [vmem:[#allocation5 + $0x1c0] ss:$8 sps:$4 sm:$0xff]   ;;  %v109_v48 = vld [vmem:[#allocation2] sm:$0xff]  ;;  %v110_v50 = vld [vmem:[#allocation2 + $0x8] sm:$0xff]  ;;  %v1495_v7 = vmov 0.0   ;;  %vm1496_vm0 = vmmov 0  }
  0x5c   :  { %v1007_v49 = vcombine.high %v109_v48, %v109_v48  ;;  %v1273_v51 = vld [vmem:[#allocation5 + $0xb4] ss:$8 sps:$4 sm:$0xff]   ;;  %v1009_v52 = vcombine.high %v110_v50, %v110_v50  ;;  %v1277_v54 = vld [vmem:[#allocation5 + $0xb0] ss:$8 sps:$4 sm:$0xff]   ;;  %v1279_v56 = vld [vmem:[#allocation5 + $0xa4] ss:$8 sps:$4 sm:$0xff]   ;;  %v1006_v4 = vcombine.low %v109_v48, %v109_v48  ;;  %v1008_v5 = vcombine.low %v110_v50, %v110_v50 }
  0x5d   :  { %518 = vmatpush1.bf16.msra.mxu0 %v1229_v18  ;;  %v1275_v53 = vld [vmem:[#allocation5 + $0x1b4] ss:$8 sps:$4 sm:$0xff]   ;;  %v1278_v55 = vld [vmem:[#allocation5 + $0x1b0] ss:$8 sps:$4 sm:$0xff]   ;;  %v1281_v57 = vld [vmem:[#allocation5 + $0x1a4] ss:$8 sps:$4 sm:$0xff]  }
  0x5e   :  { %559 = vmatpush1.bf16.msra.mxu1 %v1230_v19  ;;  %519 = vmatprep.subr.bf16.mxu0 %v1231_v20  ;;  %v1283_v58 = vld [vmem:[#allocation5 + $0xa0] ss:$8 sps:$4 sm:$0xff]   ;;  %v1285_v60 = vld [vmem:[#allocation5 + $0x94] ss:$8 sps:$4 sm:$0xff]   ;;  %v1289_v62 = vld [vmem:[#allocation5 + $0x90] ss:$8 sps:$4 sm:$0xff]  }
  0x5f   :  { %560 = vmatprep.subr.bf16.mxu1 %v1233_v21  ;;  %541 = vmatprep.mubr.bf16.mxu0 %v1007_v49  ;;  %v1284_v59 = vld [vmem:[#allocation5 + $0x1a0] ss:$8 sps:$4 sm:$0xff]   ;;  %v1287_v61 = vld [vmem:[#allocation5 + $0x194] ss:$8 sps:$4 sm:$0xff]   ;;  %v1290_v63 = vld [vmem:[#allocation5 + $0x190] ss:$8 sps:$4 sm:$0xff]  }
  0x60   :  { %582 = vmatprep.mubr.bf16.mxu1 %v1009_v52  ;;  %v1291_v0 = vld [vmem:[#allocation5 + $0x84] ss:$8 sps:$4 sm:$0xff]   ;;  %v1295_v2 = vld [vmem:[#allocation5 + $0x80] ss:$8 sps:$4 sm:$0xff]   ;;  %v1302_v8 = vld [vmem:[#allocation8 + $0x30] sm:$0xff]  }
  0x61   :  { %520 = vmatpush1.bf16.msra.mxu0 %v1235_v22  ;;  %v1293_v1 = vld [vmem:[#allocation5 + $0x184] ss:$8 sps:$4 sm:$0xff]   ;;  %v1296_v3 = vld [vmem:[#allocation5 + $0x180] ss:$8 sps:$4 sm:$0xff]   ;;  %v1306_v12 = vld [vmem:[#allocation8 + $0x10] sm:$0xff]  }
  0x62   :  { %561 = vmatpush1.bf16.msra.mxu1 %v1236_v23  ;;  %521 = vmatprep.subr.bf16.mxu0 %v1237_v24  ;;  %v1301_v6 = vld [vmem:[#allocation8 + $0x38] sm:$0xff]   ;;  %v1303_v9 = vld [vmem:[#allocation8 + $0x28] sm:$0xff]   ;;  %v1304_v10 = vld [vmem:[#allocation8 + $0x20] sm:$0xff]  }
  0x63   :  { %562 = vmatprep.subr.bf16.mxu1 %v1239_v25  ;;  %v1305_v11 = vld [vmem:[#allocation8 + $0x18] sm:$0xff]   ;;  %v1307_v13 = vld [vmem:[#allocation8 + $0x8] sm:$0xff]   ;;  %v1308_v14 = vld [vmem:[#allocation8] sm:$0xff]  }
  0x64   :  { %v1309_v15 = vld [vmem:[#allocation10 + $0x78] sm:$0xff]   ;;  %v1311_v18 = vld [vmem:[#allocation10 + $0x70] sm:$0xff]   ;;  %v1313_v20 = vld [vmem:[#allocation10 + $0x68] sm:$0xff]  }
  0x65   :  { %522 = vmatpush1.bf16.msra.mxu0 %v1241_v26  ;;  %v591_v16 = vld [vmem:[#allocation7] sm:$0xf]  ;;  %v1312_v19 = vld [vmem:[#allocation10 + $0x30] sm:$0xff]   ;;  %v1314_v21 = vld [vmem:[#allocation10 + $0x28] sm:$0xff]  }
  0x66   :  { %563 = vmatpush1.bf16.msra.mxu1 %v1242_v27  ;;  %523 = vmatprep.subr.bf16.mxu0 %v1243_v28  ;;  %v1310_v17 = vld [vmem:[#allocation10 + $0x38] sm:$0xff]   ;;  %v1315_v22 = vld [vmem:[#allocation10 + $0x60] sm:$0xff]   ;;  %v1319_v26 = vld [vmem:[#allocation10 + $0x50] sm:$0xff]  }
  0x67   :  { %564 = vmatprep.subr.bf16.mxu1 %v1245_v29  ;;  %v1316_v23 = vld [vmem:[#allocation10 + $0x20] sm:$0xff]   ;;  %v1317_v24 = vld [vmem:[#allocation10 + $0x58] sm:$0xff]   ;;  %v1320_v27 = vld [vmem:[#allocation10 + $0x10] sm:$0xff]  }
  0x68   :  { %v1318_v25 = vld [vmem:[#allocation10 + $0x18] sm:$0xff]   ;;  %v1321_v28 = vld [vmem:[#allocation10 + $0x48] sm:$0xff]  }
  0x69   :  { %524 = vmatpush1.bf16.msra.mxu0 %v1247_v30  ;;  %v1322_v29 = vld [vmem:[#allocation10 + $0x8] sm:$0xff]   ;;  %v1323_v30 = vld [vmem:[#allocation10 + $0x40] sm:$0xff]  }
  0x6a   :  { %565 = vmatpush1.bf16.msra.mxu1 %v1248_v31  ;;  %525 = vmatprep.subr.bf16.mxu0 %v1249_v32  ;;  %v1324_v31 = vld [vmem:[#allocation10] sm:$0xff]   ;;  %v1325_v32 = vld [vmem:[#allocation11 + $0x38] sm:$0xff]   ;;  %v1074_v52 = vld [vmem:[%s1601_s4] ss:$0 sm:$0xff]  ;;  %s1497_s4 = smov [#allocation13]  }
  0x6b   :  { %566 = vmatprep.subr.bf16.mxu1 %v1251_v33  ;;  %v1326_v33 = vld [vmem:[#allocation11 + $0x30] sm:$0xff]   ;;  %s994_s15 = sshll.u32 %s1497_s4, 4  ;;  %s995_s15 = int_to_ptr.vmem [resolvable:$true] %s994_s15 }
  0x6c   :  { %s1455_s16 = scalar_lea.vmem %s995_s15, 128  ;;  %p1460_p3 = scmp.lt.s32.totalorder %s995_s15, %s995_s15 }
  0x6d   :  { %526 = vmatpush2.bf16.msra.mxu0 %v1253_v34  ;;  %v1327_v34 = vld [vmem:[#allocation11 + $0x28] sm:$0xff]   ;;  %p1456_p2 = scmp.ne.s32.totalorder %s995_s15, %s1455_s16  ;;  %p1461_p4 = scmp.lt.s32.totalorder %s1455_s16, %s1455_s16 }
  0x6e   :  { %567 = vmatpush2.bf16.msra.mxu1 %v1254_v35  ;;  %527 = vmatprep.subr.bf16.mxu0 %v1255_v36  ;;  %v1328_v35 = vld [vmem:[#allocation11 + $0x20] sm:$0xff]   ;;  %v1329_v36 = vld [vmem:[#allocation11 + $0x18] sm:$0xff]  }
  0x6f   :  { %568 = vmatprep.subr.bf16.mxu1 %v1257_v37  ;;  %v1330_v37 = vld [vmem:[#allocation11 + $0x10] sm:$0xff]   ;;  %p1462_p5 = por %p1461_p4, %p1460_p3 }
  0x71   :  { %528 = vmatpush2.bf16.msra.mxu0 %v1259_v38  ;;  %v1331_v38 = vld [vmem:[#allocation11 + $0x8] sm:$0xff]   ;;  %p1463_p6 = pnand %p1462_p5, %p1456_p2 }
  0x72   :  { %569 = vmatpush2.bf16.msra.mxu1 %v1260_v39  ;;  %529 = vmatprep.subr.bf16.mxu0 %v1261_v40  ;;  %v1332_v39 = vld [vmem:[#allocation11] sm:$0xff]  }
  0x73   :  { %570 = vmatprep.subr.bf16.mxu1 %v1263_v41 }
  0x75   :  { %530 = vmatpush2.bf16.msra.mxu0 %v1265_v42 }
  0x76   :  { %571 = vmatpush2.bf16.msra.mxu1 %v1266_v43  ;;  %531 = vmatprep.subr.bf16.mxu0 %v1267_v44 }
  0x77   :  { %572 = vmatprep.subr.bf16.mxu1 %v1269_v45 }
  0x79   :  { %532 = vmatpush2.bf16.msra.mxu0 %v1271_v46 }
  0x7a   :  { %573 = vmatpush2.bf16.msra.mxu1 %v1272_v47  ;;  %533 = vmatprep.subr.bf16.mxu0 %v1273_v51 }
  0x7b   :  { %574 = vmatprep.subr.bf16.mxu1 %v1275_v53 }
  0x7d   :  { %534 = vmatpush2.bf16.msra.mxu0 %v1277_v54 }
  0x7e   :  { %575 = vmatpush2.bf16.msra.mxu1 %v1278_v55  ;;  %535 = vmatprep.subr.bf16.mxu0 %v1279_v56 }
  0x7f   :  { %576 = vmatprep.subr.bf16.mxu1 %v1281_v57 }
  0x81   :  { %536 = vmatpush2.bf16.msra.mxu0 %v1283_v58 }
  0x82   :  { %577 = vmatpush2.bf16.msra.mxu1 %v1284_v59  ;;  %537 = vmatprep.subr.bf16.mxu0 %v1285_v60 }
  0x83   :  { %578 = vmatprep.subr.bf16.mxu1 %v1287_v61 }
  0x85   :  { %538 = vmatpush2.bf16.msra.mxu0 %v1289_v62 }
  0x86   :  { %579 = vmatpush2.bf16.msra.mxu1 %v1290_v63  ;;  %539 = vmatprep.subr.bf16.mxu0 %v1291_v0 }
  0x87   :  { %580 = vmatprep.subr.bf16.mxu1 %v1293_v1 }
  0x89   :  { %540 = vmatpush2.bf16.msra.mxu0 %v1295_v2  ;;  %v1107_v2 = vld [vmem:[%s1604_s7] ss:$0 sm:$0xff] }
  0x8a   :  { %581 = vmatpush2.bf16.msra.mxu1 %v1296_v3  ;;  %1148 = vmatprep.subr.bf16.mxu0 %v1495_v7 }
  0x8b   :  { %1168 = vmatprep.subr.bf16.mxu1 %v1495_v7 }
  0x8c   :  { %542 = vmatmul.mubr.bf16.vlgmr.msra.gmra.mxu0 %v1006_v4 }
  0x8d   :  { %583 = vmatmul.mubr.bf16.vlgmr.msra.gmra.mxu1 %v1008_v5  ;;  %1149 = vmatpush3.bf16.msra.mxu0 %v1301_v6 }
  0x8e   :  { %1164 = vmatprep.mubr.msk.bf16.mxu0 %vm1496_vm0, %v1495_v7  ;;  %1150 = vmatprep.subr.bf16.mxu0 %v1495_v7 }
  0x8f   :  { %1184 = vmatprep.mubr.msk.bf16.mxu1 %vm1496_vm0, %v1495_v7  ;;  %1169 = vmatpush3.bf16.msra.mxu1 %v1325_v32 }
  0x90   :  { %1170 = vmatprep.subr.bf16.mxu1 %v1495_v7 }
  0x91   :  { %1151 = vmatpush3.bf16.msra.mxu0 %v1302_v8 }
  0x92   :  { %1152 = vmatprep.subr.bf16.mxu0 %v1495_v7 }
  0x93   :  { %1171 = vmatpush3.bf16.msra.mxu1 %v1326_v33 }
  0x94   :  { %1172 = vmatprep.subr.bf16.mxu1 %v1495_v7 }
  0x95   :  { %1153 = vmatpush3.bf16.msra.mxu0 %v1303_v9 }
  0x96   :  { %1154 = vmatprep.subr.bf16.mxu0 %v1495_v7 }
  0x97   :  { %1173 = vmatpush3.bf16.msra.mxu1 %v1327_v34 }
  0x98   :  { %1174 = vmatprep.subr.bf16.mxu1 %v1495_v7 }
  0x99   :  { %1155 = vmatpush3.bf16.msra.mxu0 %v1304_v10 }
  0x9a   :  { %1156 = vmatprep.subr.bf16.mxu0 %v1495_v7 }
  0x9b   :  { %1175 = vmatpush3.bf16.msra.mxu1 %v1328_v35 }
  0x9c   :  { %1176 = vmatprep.subr.bf16.mxu1 %v1495_v7 }
  0x9d   :  { %1157 = vmatpush3.bf16.msra.mxu0 %v1305_v11 }
  0x9e   :  { %1158 = vmatprep.subr.bf16.mxu0 %v1495_v7 }
  0x9f   :  { %1177 = vmatpush3.bf16.msra.mxu1 %v1329_v36 }
  0xa0   :  { %1178 = vmatprep.subr.bf16.mxu1 %v1495_v7 }
  0xa1   :  { %1159 = vmatpush3.bf16.msra.mxu0 %v1306_v12 }
  0xa2   :  { %1160 = vmatprep.subr.bf16.mxu0 %v1495_v7 }
  0xa3   :  { %1179 = vmatpush3.bf16.msra.mxu1 %v1330_v37 }
  0xa4   :  { %1180 = vmatprep.subr.bf16.mxu1 %v1495_v7 }
  0xa5   :  { %1161 = vmatpush3.bf16.msra.mxu0 %v1307_v13 }
  0xa6   :  { %1162 = vmatprep.subr.bf16.mxu0 %v1495_v7 }
  0xa7   :  { %1181 = vmatpush3.bf16.msra.mxu1 %v1331_v38 }
  0xa8   :  { %1182 = vmatprep.subr.bf16.mxu1 %v1495_v7 }
  0xa9   :  { %1163 = vmatpush3.bf16.msra.mxu0 %v1308_v14 }
  0xaa   :  { %1126 = vmatprep.subr.bf16.mxu0 %v1309_v15 }
  0xab   :  { %1183 = vmatpush3.bf16.msra.mxu1 %v1332_v39 }
  0xac   :  { %1165 = vmatmul.mubr.bf16.vlgmr.msra.gmra.mxu0 %v591_v16 }
  0xad   :  { %1127 = vmatpush3.bf16.msra.mxu0 %v1310_v17 }
  0xae   :  { %1128 = vmatprep.subr.bf16.mxu0 %v1311_v18 }
  0xb1   :  { %1129 = vmatpush3.bf16.msra.mxu0 %v1312_v19 }
  0xb2   :  { %1130 = vmatprep.subr.bf16.mxu0 %v1313_v20 }
  0xb5   :  { %1131 = vmatpush3.bf16.msra.mxu0 %v1314_v21 }
  0xb6   :  { %1132 = vmatprep.subr.bf16.mxu0 %v1315_v22 }
  0xb9   :  { %1133 = vmatpush3.bf16.msra.mxu0 %v1316_v23 }
  0xba   :  { %1134 = vmatprep.subr.bf16.mxu0 %v1317_v24 }
  0xbd   :  { %1135 = vmatpush3.bf16.msra.mxu0 %v1318_v25 }
  0xbe   :  { %1136 = vmatprep.subr.bf16.mxu0 %v1319_v26 }
  0xc1   :  { %1137 = vmatpush3.bf16.msra.mxu0 %v1320_v27 }
  0xc2   :  { %1138 = vmatprep.subr.bf16.mxu0 %v1321_v28 }
  0xc5   :  { %1139 = vmatpush3.bf16.msra.mxu0 %v1322_v29 }
  0xc6   :  { %1140 = vmatprep.subr.bf16.mxu0 %v1323_v30 }
  0xc9   :  { %1141 = vmatpush3.bf16.msra.mxu0 %v1324_v31 }
 0x14c   :  { %v543_v40 = vpop.f32.mrf.mxu0 }
 0x14d   :  { %v584_v41 = vpop.f32.mrf.mxu1 }
 0x14e   :  { %v585_v42 = vadd.f32 %v584_v41, %v543_v40  ;;  %v545_v43 = vpop.f32.mrf.mxu0 }
 0x14f   :  { %v586_v44 = vpop.f32.mrf.mxu1 }
 0x150   :  { %v587_v45 = vadd.f32 %v586_v44, %v545_v43  ;;  %v547_v46 = vpop.f32.mrf.mxu0  ;;  %v704_v49 = vpack.c.bf16 %v585_v42, %v585_v42 }
 0x151   :  { %v588_v47 = vpop.f32.mrf.mxu1 }
 0x152   :  { %v705_v48 = vpack.c.bf16 %v587_v45, %v587_v45  ;;  %v548_v50 = vpop.f32.mrf.mxu0 }
 0x153   :  { %v589_v51 = vpop.f32.mrf.mxu1 }
 0x154   :  { %971 = vmatprep.mubr.bf16.mxu0 %v705_v48 }
 0x155   :  { %972 = vmatmul.mubr.bf16.vlgmr.msra.gmra.mxu0 %v704_v49 }
 0x16c   :  { %v697_v53 = vpop.f32.mrf.mxu0 }
 0x16d   :  { %v698_v54 = vadd.f32 %v1074_v52, %v697_v53 }
 0x16e   :  { %v1166_v55 = vpop.f32.mrf.mxu0 }
 0x16f   :  { %1333 = vtanh.f32 %v698_v54 }
 0x170   :  { %v700_v56 = vpop.f32.mrf.mxu0 }
 0x172   :  { %v1167_v57 = vpop.f32.mrf.mxu0 }
 0x17c   :  { %v1334_v58 = vpop.eup %1333 }
 0x17d   :  { %v738_v59 = vpack.c.bf16 %v1334_v58, %v1334_v58 }
 0x17f   :  { %1185 = vmatmul.mubr.bf16.vlgmr.msra.gmra.mxu1 %v738_v59 }
 0x215   :  { %v1142_v60 = vpop.f32.mrf.mxu0 }
 0x217   :  { %v1143_v61 = vpop.f32.mrf.mxu0 }
 0x218   :  { %v1144_v0 = vadd.f32 %v1143_v61, %v1142_v60 }
 0x219   :  { %v1145_v62 = vpop.f32.mrf.mxu0 }
 0x21b   :  { %v1146_v63 = vpop.f32.mrf.mxu0 }
 0x23f   :  { %v837_v1 = vpop.f32.mrf.mxu1 }
 0x240   :  { %v974_v3 = vadd.f32 %v1144_v0, %v837_v1 }
 0x241   :  { %v1186_v4 = vpop.f32.mrf.mxu1 }
 0x242   :  { %v986_v5 = vadd.f32 %v1107_v2, %v974_v3 }
 0x243   :  { %v840_v6 = vpop.f32.mrf.mxu1 }
 0x244   :  { %987 = vst [vmem:[#allocation13] sm:$0xff] %v986_v5 }
 0x245   :  { %v1187_v7 = vpop.f32.mrf.mxu1 }
 0x246   :  { %1466 = shalt.err (!%p1463_p6)
}
 0x247   :  { %997 = dma.vmem_to_hbm [thread:$0]  %s995_s15, 128, %s1605_s8, [#allocation4]  }
 0x248   :  { %1483 = dma.done.wait [#allocation4], 128  }
 0x249   :  { %1484 = vsyncadd [#allocation4], 4294967168 }
 0x24a   :  { %1001 = vsyncpa [#allocation3], 1 }
 0x24b   :  { %1002 = vsyncpa [#allocation6], 1 }
 0x24c   :  { %1003 = vsyncpa [#allocation9], 1 }
 0x24d   :  { %1004 = vsyncpa [#allocation12], 1 }
 0x24e   :  { %1005 = vsyncpa [#allocation4], 1 }

</bundles_post_ra>
